<compile_context>
chip_gen: v7x
topology: tpu7x:2x2x1
jax: 0.10.0
libtpu: 0.0.40
codegen_flags: <defaults>
</compile_context>

<pallas_src>
import functools

import jax
import jax.numpy as jnp
from jax.experimental import pallas as pl
from jax.experimental.pallas import tpu as pltpu


# ----------------------------- Pallas kernel --------------------------------
def _fused_pool_project_kernel(x_ref, w_ref, b_ref, o_ref, acc_ref, *, inv_s):
    """One S-tile step: accumulate the spatial sum; on the last step, scale to
    a mean and apply the channel projection + bias.

    x_ref:   (N, C_in, S_tile)  input tile (spatial flattened on the lane axis)
    w_ref:   (C_in, C_out)      projection weights (block index constant -> resident)
    b_ref:   (1, C_out)         bias (resident)
    o_ref:   (N, C_out)         lane-dense output, written once on the last step
    acc_ref: (N, C_in) f32      running spatial sum (VMEM scratch)
    """
    si = pl.program_id(0)

    @pl.when(si == 0)
    def _init():
        acc_ref[...] = jnp.zeros_like(acc_ref)

    # Force f32 accumulation regardless of input dtype (bf16-safe).
    acc_ref[...] += jnp.sum(x_ref[...].astype(jnp.float32), axis=-1)

    @pl.when(si == pl.num_programs(0) - 1)
    def _finalize():
        mean_x = acc_ref[...] * inv_s                                # (N, C_in)
        proj = jnp.dot(mean_x, w_ref[...].astype(jnp.float32),
                       preferred_element_type=jnp.float32)           # (N, C_out)
        o_ref[...] = (proj + b_ref[...].astype(jnp.float32)).astype(o_ref.dtype)


def _choose_s_tile(n, c_in, s, itemsize, budget_bytes):
    """Largest S tile that (a) keeps one input block under `budget_bytes`
    (the pipeline double-buffers -> ~2x that in VMEM, safe for v7x's 64 MiB /
    v5e's 16 MiB scoped default) and (b) tiles S exactly: either the full S or
    a multiple-of-128 divisor of S."""
    if n * c_in * s * itemsize <= budget_bytes:
        return s
    max_elems = max(budget_bytes // (n * c_in * itemsize), 128)
    cand = (max_elems // 128) * 128
    while cand >= 128:
        if s % cand == 0:
            return cand
        cand -= 128
    # No multiple-of-128 divisor fits the budget; fall back to the full S.
    # TODO(synk): for awkward large S on v7x, add masked partial S tiles.
    return s


def fused_global_pool_project(x, w_t, b, *, block_budget_bytes=4 << 20):
    """F.avg_pool3d(base_model(x), spatial).view(N, -1), with the linear
    base-model projection fused (pool-then-project).

    x:   (N, C_in, D, H, W)   float32
    w_t: (C_in, C_out)        projection weight, already transposed
    b:   (C_out,)             projection bias
    returns (N, C_out)
    """
    n, c_in, d, h, w_sp = x.shape
    s = d * h * w_sp
    c_out = w_t.shape[1]

    x3 = x.reshape(n, c_in, s)          # spatial flattened onto the lane axis
    b2 = b.reshape(1, c_out)

    s_tile = _choose_s_tile(n, c_in, s, x3.dtype.itemsize, block_budget_bytes)
    num_s = s // s_tile                  # == 1 at demo size (no grid overhead)

    kernel = functools.partial(_fused_pool_project_kernel, inv_s=1.0 / float(s))

    return pl.pallas_call(
        kernel,
        out_shape=jax.ShapeDtypeStruct((n, c_out), x.dtype),
        grid_spec=pltpu.PrefetchScalarGridSpec(
            num_scalar_prefetch=0,
            # Single grid axis over S (the reduction axis). At demo sizes it
            # collapses to one step; for large S it restores double-buffered
            # pipelining within the VMEM budget.
            grid=(num_s,),
            in_specs=[
                pl.BlockSpec((n, c_in, s_tile), lambda si: (0, 0, si)),
                pl.BlockSpec((c_in, c_out), lambda si: (0, 0)),   # resident
                pl.BlockSpec((1, c_out), lambda si: (0, 0)),      # resident
            ],
            # Full (N, C_out) output in one block: C_out = 512 = 4x128 lanes
            # -> unmasked, lane-dense stores (no vst.msk slivers).
            out_specs=pl.BlockSpec((n, c_out), lambda si: (0, 0)),
            scratch_shapes=[pltpu.VMEM((n, c_in), jnp.float32)],
        ),
        compiler_params=pltpu.CompilerParams(
            # S is a reduction axis with a resident output -> "arbitrary".
            dimension_semantics=("arbitrary",),
        ),
    )(x3, w_t, b2)


# ------------------------- synthetic "base_model" ---------------------------
def make_params(key, n_class=1):
    """Deterministic parameter construction (shapes from TargetNet.__init__)."""
    k1, k2, k3, k4 = jax.random.split(key, 4)
    return {
        # stand-in base model: 1x1x1 conv projecting C_in -> 512 channels
        "base_w": jax.random.normal(k1, (512, 4), dtype=jnp.float32) * 0.05,
        "base_b": jax.random.normal(k2, (512,), dtype=jnp.float32) * 0.01,
        # dense_1: Linear(512 -> 1024), dense_2: Linear(1024 -> n_class)
        # (declared in __init__ but unused by forward -- kept for fidelity)
        "dense_1_w": jax.random.normal(k3, (1024, 512), dtype=jnp.float32) * 0.02,
        "dense_1_b": jnp.zeros((1024,), dtype=jnp.float32),
        "dense_2_w": jax.random.normal(k4, (n_class, 1024), dtype=jnp.float32) * 0.02,
        "dense_2_b": jnp.zeros((n_class,), dtype=jnp.float32),
    }


def base_model_apply(params, x):
    """Un-fused synthetic base model (reference path only):
    x (N, C_in, D, H, W) -> out512 (N, 512, D, H, W)."""
    out512 = jnp.einsum("ncdhw,oc->nodhw", x, params["base_w"],
                        precision=jax.lax.Precision.HIGHEST)
    out512 = out512 + params["base_b"][None, :, None, None, None]
    skip_out512 = out512  # mirrors the unused skip_out attribute assignment
    return out512, skip_out512


@jax.jit
def target_net_forward(params, x):
    # TargetNet.forward: base_model(x) then global avg-pool of out512 over
    # (D, H, W) -> (N, 512).  The linear stand-in lets us commute the pool
    # with the projection and fuse everything into one Pallas kernel, so the
    # (N, 512, D, H, W) out512 intermediate never touches HBM.
    w_t = params["base_w"].T           # (C_in, 512)
    return fused_global_pool_project(x, w_t, params["base_b"])


# --------------------------------- main --------------------------------------
if __name__ == "__main__":
    key = jax.random.PRNGKey(0)
    k_params, k_x = jax.random.split(key)

    params = make_params(k_params, n_class=1)

    # small 5D NCDHW input: (N=2, C_in=4, D=4, H=8, W=8) -> S = 256
    x = jax.random.normal(k_x, (2, 4, 4, 8, 8), dtype=jnp.float32)

    out = target_net_forward(params, x)
    out = jax.block_until_ready(out)

    # Reference: un-fused path (materialize out512, then global mean pool).
    ref_out512, _ = base_model_apply(params, x)
    ref = jnp.mean(ref_out512, axis=(2, 3, 4))

    assert out.shape == (2, 512), out.shape
    # Pool-then-project is mathematically identical to project-then-pool for
    # the linear stand-in; f32 rounding/order differences stay far below 1e-4.
    assert jnp.allclose(out, ref, atol=1e-4, rtol=1e-4), "mismatch vs reference"

    print("KERNEL_OK")
</pallas_src>

<mosaic_0001>
module attributes {stable_mosaic.version = 11 : i64} {
  func.func @_fused_pool_project_kernel(%arg0: i32, %arg1: memref<2x4x256xf32, #tpu.memory_space<vmem>>, %arg2: memref<4x512xf32, #tpu.memory_space<vmem>>, %arg3: memref<1x512xf32, #tpu.memory_space<vmem>>, %arg4: memref<2x512xf32, #tpu.memory_space<vmem>>, %arg5: memref<2x4xf32, #tpu.memory_space<vmem>>) attributes {dimension_semantics = [#tpu.dimension_semantics<arbitrary>], iteration_bounds = array<i64: 1>, scalar_prefetch = 0 : i64, scratch_operands = 1 : i64, tpu.core_type = #tpu.core_type<tc>, window_params = [{transform_indices = @transform_0, window_bounds = array<i64: 2, 4, 256>}, {pipeline_mode = #tpu.pipeline_mode<synchronous>, transform_indices = @transform_1, window_bounds = array<i64: 4, 512>}, {pipeline_mode = #tpu.pipeline_mode<synchronous>, transform_indices = @transform_2, window_bounds = array<i64: 1, 512>}, {pipeline_mode = #tpu.pipeline_mode<synchronous>, transform_indices = @transform_3, window_bounds = array<i64: 2, 512>}]} {
    %c0_i32 = arith.constant 0 : i32
    %0 = arith.cmpi eq, %arg0, %c0_i32 : i32
    %1 = arith.extui %0 : i1 to i32
    %c0_i32_0 = arith.constant 0 : i32
    %2 = arith.cmpi ne, %1, %c0_i32_0 : i32
    scf.if %2 {
      %cst_9 = arith.constant 0.000000e+00 : f32
      %11 = vector.broadcast %cst_9 : f32 to vector<2x4xf32>
      %c0_10 = arith.constant 0 : index
      %c0_11 = arith.constant 0 : index
      %12 = vector.load %arg5[%c0_10, %c0_11] : memref<2x4xf32, #tpu.memory_space<vmem>>, vector<2x4xf32>
      tpu.vector_store %arg5[%c0_10, %c0_11], %11 {strides = array<i32>} : memref<2x4xf32, #tpu.memory_space<vmem>>, vector<2x4xf32>,
    } else {
    }
    %c0 = arith.constant 0 : index
    %c0_1 = arith.constant 0 : index
    %3 = vector.load %arg5[%c0, %c0_1] : memref<2x4xf32, #tpu.memory_space<vmem>>, vector<2x4xf32>
    %c0_2 = arith.constant 0 : index
    %c0_3 = arith.constant 0 : index
    %c0_4 = arith.constant 0 : index
    %4 = vector.load %arg1[%c0_2, %c0_3, %c0_4] : memref<2x4x256xf32, #tpu.memory_space<vmem>>, vector<2x4x256xf32>
    %cst = arith.constant dense<0.000000e+00> : vector<2x4xf32>
    %5 = vector.multi_reduction <add>, %4, %cst [2] : vector<2x4x256xf32> to vector<2x4xf32>
    %6 = arith.addf %3, %5 : vector<2x4xf32>
    %c0_5 = arith.constant 0 : index
    %c0_6 = arith.constant 0 : index
    %7 = vector.load %arg5[%c0_5, %c0_6] : memref<2x4xf32, #tpu.memory_space<vmem>>, vector<2x4xf32>
    tpu.vector_store %arg5[%c0_5, %c0_6], %6 {strides = array<i32>} : memref<2x4xf32, #tpu.memory_space<vmem>>, vector<2x4xf32>,
    %c0_i32_7 = arith.constant 0 : i32
    %8 = arith.cmpi eq, %arg0, %c0_i32_7 : i32
    %9 = arith.extui %8 : i1 to i32
    %c0_i32_8 = arith.constant 0 : i32
    %10 = arith.cmpi ne, %9, %c0_i32_8 : i32
    scf.if %10 {
      %c0_9 = arith.constant 0 : index
      %c0_10 = arith.constant 0 : index
      %11 = vector.load %arg5[%c0_9, %c0_10] : memref<2x4xf32, #tpu.memory_space<vmem>>, vector<2x4xf32>
      %cst_11 = arith.constant 3.906250e-03 : f32
      %12 = vector.broadcast %cst_11 : f32 to vector<2x4xf32>
      %13 = arith.mulf %11, %12 : vector<2x4xf32>
      %c0_12 = arith.constant 0 : index
      %c0_13 = arith.constant 0 : index
      %14 = vector.load %arg2[%c0_12, %c0_13] : memref<4x512xf32, #tpu.memory_space<vmem>>, vector<4x512xf32>
      %cst_14 = arith.constant dense<0.000000e+00> : vector<2x512xf32>
      %15 = tpu.matmul %13, %14, %cst_14 {dimension_numbers = #tpu.dot_dimension_numbers<[1], [0], [0], [1], [0, 0, 1, 1], [], []>} : vector<2x4xf32>, vector<4x512xf32>, vector<2x512xf32> -> vector<2x512xf32>
      %c0_15 = arith.constant 0 : index
      %c0_16 = arith.constant 0 : index
      %16 = vector.load %arg3[%c0_15, %c0_16] : memref<1x512xf32, #tpu.memory_space<vmem>>, vector<1x512xf32>
      %17 = vector.broadcast %16 : vector<1x512xf32> to vector<2x512xf32>
      %18 = arith.addf %15, %17 : vector<2x512xf32>
      %c0_17 = arith.constant 0 : index
      %c0_18 = arith.constant 0 : index
      %19 = vector.load %arg4[%c0_17, %c0_18] : memref<2x512xf32, #tpu.memory_space<vmem>>, vector<2x512xf32>
      tpu.vector_store %arg4[%c0_17, %c0_18], %18 {strides = array<i32>} : memref<2x512xf32, #tpu.memory_space<vmem>>, vector<2x512xf32>,
    } else {
    }
    return
  }
  func.func @transform_0(%arg0: i32) -> (i32, i32, i32) {
    %c0_i32 = arith.constant 0 : i32
    %c0_i32_0 = arith.constant 0 : i32
    %c0_i32_1 = arith.constant 0 : i32
    return %c0_i32, %c0_i32_0, %arg0 : i32, i32, i32
  }
  func.func @transform_1(%arg0: i32) -> (i32, i32) {
    %c0_i32 = arith.constant 0 : i32
    %c0_i32_0 = arith.constant 0 : i32
    %c0_i32_1 = arith.constant 0 : i32
    return %c0_i32, %c0_i32_0 : i32, i32
  }
  func.func @transform_2(%arg0: i32) -> (i32, i32) {
    %c0_i32 = arith.constant 0 : i32
    %c0_i32_0 = arith.constant 0 : i32
    %c0_i32_1 = arith.constant 0 : i32
    return %c0_i32, %c0_i32_0 : i32, i32
  }
  func.func @transform_3(%arg0: i32) -> (i32, i32) {
    %c0_i32 = arith.constant 0 : i32
    %c0_i32_0 = arith.constant 0 : i32
    %c0_i32_1 = arith.constant 0 : i32
    return %c0_i32, %c0_i32_0 : i32, i32
  }
}

</mosaic_0001>

<bundles_post_ra>
// kernel: target_net_forward.1
= control target key start
LH: loop header
LB: loop body
LE: loop exit
PB: predicated region body
PF: predicated region fallthrough
CT: control target
= control target key end

     0   :  { %vm30_vm0 = vcmask 1043456   ;;  %s380_s0 = inlined_call_operand.vmem [shape: f32[2,4,256], index: 0, kind: input, shape index: {}]   ;;  %s381_s1 = inlined_call_operand.vmem [shape: f32[4,512], index: 1, kind: input, shape index: {}]   ;;  %s382_s2 = inlined_call_operand.vmem [shape: f32[1,512], index: 2, kind: input, shape index: {}]   ;;  %s383_s3 = inlined_call_operand.hbm [shape: f32[2,512], index: 3, kind: output, shape index: {}]  }
   0x1   :  { %v22_v0 = vld [vmem:[%s380_s0] sm:$0xff]  ;;  %v23_v1 = vld [vmem:[%s380_s0 + $0x8] sm:$0xff] }
   0x2   :  { %8 = vsyncpa [#allocation4], 0  ;;  %v26_v2 = vcombine.high %v22_v0, %v22_v0  ;;  %v31_v3 = vsel %vm30_vm0, %v22_v0, 0.0  ;;  %v27_v4 = vcombine.high %v23_v1, %v23_v1  ;;  %v36_v6 = vsel %vm30_vm0, %v23_v1, 0.0  ;;  %v64_v11 = vld [vmem:[%s381_s1] sm:$0xff]  ;;  %v65_v12 = vld [vmem:[%s381_s1 + $0x8] sm:$0xff] }
   0x3   :  { %vm19_vm1 = vcmask 25600   ;;  %v320_v10 = vmov 0.0   ;;  %v90_v13 = vcombine.high %v64_v11, %v64_v11  ;;  %v91_v14 = vcombine.high %v65_v12, %v65_v12  ;;  %v66_v30 = vld [vmem:[%s382_s2] sm:$0xf]  ;;  %s322_s2 = smov [#allocation3]  }
   0x4   :  { %v32_v5 = vsel %vm30_vm0, %v26_v2, 0.0  ;;  %v37_v7 = vsel %vm30_vm0, %v27_v4, 0.0  ;;  %20 = vst.msk [vmem:[#allocation2] sm:$0x3] %vm19_vm1, %v320_v10  ;;  %168 = vmatprep.mubr.f32.mxu0 %v320_v10  ;;  %239 = vmatprep.mubr.f32.mxu1 %v320_v10  ;;  %v43_v15 = vlaneseq  ;;  %vm53_vm2 = vcmask 1041409   ;;  %s275_s20 = sshll.u32 %s322_s2, 4  ;;  %s276_s20 = int_to_ptr.vmem [resolvable:$true] %s275_s20 }
   0x5   :  { %v33_v8 = vadd.f32 %v32_v5, %v31_v3  ;;  %v38_v9 = vadd.f32 %v37_v7, %v36_v6  ;;  %283 = vmatprep.subr.msk.mxu0 %vm30_vm0, %v90_v13  ;;  %286 = vmatprep.subr.msk.mxu1 %vm30_vm0, %v91_v14  ;;  %vm92_vm3 = vcmask 31744   ;;  %v321_v33 = vmov 1983009808   ;;  %s296_s21 = scalar_lea.vmem %s276_s20, 128  ;;  %p301_p1 = scmp.lt.s32.totalorder %s276_s20, %s276_s20 }
   0x6   :  { %284 = vmatpush1.msk.msra.mxu0 %vm30_vm0, %v64_v11  ;;  %287 = vmatpush1.msk.msra.mxu1 %vm30_vm0, %v65_v12  ;;  %v44_v16 = vand.u32 127, %v43_v15  ;;  %v46_v17 = vshrl.u32 %v43_v15, 7  ;;  %v253_v34 = vunpack.c.l.s4 %v321_v33  ;;  %p297_p0 = scmp.ne.s32.totalorder %s276_s20, %s296_s21  ;;  %p302_p2 = scmp.lt.s32.totalorder %s296_s21, %s296_s21 }
   0x7   :  { %34 = vadd.xlane.f32.xlu0 %v33_v8 }
   0x8   :  { %v47_v19 = vsub.s32 %v44_v16, %v46_v17  ;;  %v70_v28 = vsub.s32 0, %v46_v17  ;;  %v78_v29 = vsub.s32 2, %v46_v17  ;;  %v74_v31 = vsub.s32 1, %v46_v17  ;;  %p303_p3 = por %p302_p2, %p301_p1 }
   0x9   :  { %v82_v32 = vsub.s32 3, %v46_v17  ;;  %v254_v39 = vunpack.c.0.s8 %v253_v34 }
   0xa   :  { %v71_v35 = vrot.slane %v66_v30, %v70_v28  ;;  %v79_v36 = vrot.slane %v66_v30, %v78_v29  ;;  %v75_v37 = vrot.slane %v66_v30, %v74_v31  ;;  %p304_p4 = pnand %p303_p3, %p297_p0 }
   0xb   :  { %39 = vadd.xlane.f32.xlu0 %v38_v9  ;;  %v21_v23 = vld [vmem:[#allocation2] sm:$0x3]  ;;  %v83_v38 = vrot.slane %v66_v30, %v82_v32  ;;  %v257_v48 = vsub.s32 %v254_v39, %v46_v17 }
  0x94   :  { %v35_v18 = vpop.xlane.xlu0 %34 }
  0x95   :  { %v48_v21 = vrot.slane %v35_v18, %v47_v19 }
  0x98   :  { %v40_v20 = vpop.xlane.xlu0 %39 }
  0x99   :  { %v52_v22 = vrot.slane %v40_v20, %v47_v19 }
  0x9b   :  { %v54_v24 = vsel %vm53_vm2, %v52_v22, %v48_v21 }
  0x9c   :  { %v56_v25 = vadd.f32 %v54_v24, %v21_v23 }
  0x9e   :  { %58 = vst.msk [vmem:[#allocation2] sm:$0x3] %vm19_vm1, %v56_v25 }
  0xa5   :  { %v62_v26 = vld [vmem:[#allocation2] sm:$0x3] }
  0xa6   :  { %v63_v27 = vmul.f32 0.00390625, %v62_v26 }
  0xa8   :  { %285 = vmatmul.mubr.msk.f32.vlgmr.msra.gmra.mrb[0].mxu0 %vm92_vm3, %v63_v27  ;;  %288 = vmatmul.mubr.msk.f32.vlgmr.msra.gmra.mrb[0].mxu1 %vm92_vm3, %v63_v27 }
 0x17b   :  { %v170_v40 = vpop.f32.mrb[0].mxu0  ;;  %v241_v41 = vpop.f32.mrb[0].mxu1 }
 0x17c   :  { %v171_v42 = vadd.f32 %v170_v40, %v71_v35  ;;  %v242_v43 = vadd.f32 %v241_v41, %v79_v36  ;;  %v172_v44 = vpop.f32.mrb[1].mxu0  ;;  %v243_v45 = vpop.f32.mrb[1].mxu1 }
 0x17d   :  { %v173_v46 = vadd.f32 %v172_v44, %v75_v37  ;;  %v244_v47 = vadd.f32 %v243_v45, %v83_v38 }
 0x17f   :  { %v250_v49 = vcombine.low %v171_v42, %v173_v46  ;;  %v251_v50 = vcombine.low %v242_v43, %v244_v47 }
 0x181   :  { %v258_v51 = vrot.slane %v250_v49, %v257_v48  ;;  %v265_v52 = vrot.slane %v251_v50, %v257_v48 }
 0x183   :  { %v266_v53 = vcombine.low %v258_v51, %v265_v52 }
 0x185   :  { %268 = vst [vmem:[#allocation3] sm:$0xff] %v266_v53 }
 0x186   :  { %307 = shalt.err (!%p304_p4)
}
 0x187   :  { %s308_s24 = scalar_lea.hbm %s383_s3, 128 }
 0x188   :  { %p309_p5 = scmp.ne.s32.totalorder %s383_s3, %s308_s24  ;;  %p312_p6 = scmp.lt.u32.totalorder %s308_s24, %s383_s3 }
 0x18a   :  { %p314_p7 = pnand %p312_p6, %p309_p5 }
 0x18c   :  { %317 = shalt.err (!%p314_p7)
}
 0x18d   :  { %278 = dma.vmem_to_hbm [thread:$0]  %s276_s20, 128, %s383_s3, [#allocation4]  }
 0x18e   :  { %318 = dma.done.wait [#allocation4], 128  }
 0x18f   :  { %319 = vsyncadd [#allocation4], 4294967168 }
 0x190   :  { %282 = vsyncpa [#allocation4], 1 }

</bundles_post_ra>
